<compile_context>
chip_gen: v5e
topology: v5e:2x2
jax: 0.10.0
libtpu: 0.0.40
codegen_flags: <defaults>
</compile_context>

<pallas_src>
import jax
import jax.numpy as jnp
from jax.experimental import pallas as pl
from jax.experimental.pallas import tpu as pltpu

N_PAD = 128  # lane-padded width for every hidden/output feature dim


def dqn_mlp_kernel(x_ref, w1_ref, w2_ref, w3_ref, w4_ref, b_ref, out_ref):
    """Fused 4-layer MLP: bf16 matmuls on MXU, f32 bias/ReLU on VPU, all in VMEM."""
    b = b_ref[...]                              # (8, 128) f32; rows 0..3 are real biases
    x = x_ref[...].astype(jnp.bfloat16)         # bf16 operands -> single-pass MXU

    h = jnp.dot(x, w1_ref[...], preferred_element_type=jnp.float32) + b[0:1, :]
    h = jnp.maximum(h, 0.0)
    # dropout(p=0.2): identity in eval/inference mode.

    h = jnp.dot(h.astype(jnp.bfloat16), w2_ref[...],
                preferred_element_type=jnp.float32) + b[1:2, :]
    h = jnp.maximum(h, 0.0)

    h = jnp.dot(h.astype(jnp.bfloat16), w3_ref[...],
                preferred_element_type=jnp.float32) + b[2:3, :]
    h = jnp.maximum(h, 0.0)

    q = jnp.dot(h.astype(jnp.bfloat16), w4_ref[...],
                preferred_element_type=jnp.float32) + b[3:4, :]
    out_ref[...] = q                            # lane-dense (tile_b, 128) f32 store


def dqn_forward(x, params, action_size, tile_b=1024):
    """x: [batch, state_size] f32. Returns [batch, action_size] f32 Q-values."""
    batch, state_size = x.shape

    # Clamp the batch tile to the (8-rounded) batch; keep it a multiple of 8.
    tile_b = max(8, min(tile_b, pl.cdiv(batch, 8) * 8))
    padded_batch = pl.cdiv(batch, tile_b) * tile_b
    if padded_batch != batch:
        x = jnp.pad(x, ((0, padded_batch - batch), (0, 0)))

    grid = (padded_batch // tile_b,)

    out = pl.pallas_call(
        dqn_mlp_kernel,
        out_shape=jax.ShapeDtypeStruct((padded_batch, N_PAD), jnp.float32),
        grid=grid,
        in_specs=[
            pl.BlockSpec((tile_b, state_size), lambda i: (i, 0)),   # x: batch-tiled
            pl.BlockSpec((state_size, N_PAD), lambda i: (0, 0)),    # w1 (resident)
            pl.BlockSpec((N_PAD, N_PAD), lambda i: (0, 0)),         # w2 (resident)
            pl.BlockSpec((N_PAD, N_PAD), lambda i: (0, 0)),         # w3 (resident)
            pl.BlockSpec((N_PAD, N_PAD), lambda i: (0, 0)),         # w4 (resident)
            pl.BlockSpec((8, N_PAD), lambda i: (0, 0)),             # packed biases
        ],
        out_specs=pl.BlockSpec((tile_b, N_PAD), lambda i: (i, 0)),
        compiler_params=pltpu.CompilerParams(
            dimension_semantics=("parallel",)),  # megacore split on v7x
    )(x, params["w1"], params["w2"], params["w3"], params["w4"], params["b"])

    # Strip batch padding and the zero-padded Q columns (keep real actions only).
    return out[:batch, :action_size]


def init_params(key, state_size, action_size):
    """nn.Linear-style init (uniform +/- 1/sqrt(fan_in)), stored [in, out],
    zero-padded to 128 output lanes; weights bf16, packed biases f32."""
    dims = [(state_size, 64), (64, 64), (64, 32), (32, action_size)]
    in_pads = [state_size, N_PAD, N_PAD, N_PAD]
    params = {}
    b_rows = []
    for i, (fan_in, fan_out) in enumerate(dims, start=1):
        key, kw, kb = jax.random.split(key, 3)
        bound = 1.0 / jnp.sqrt(jnp.float32(fan_in))
        w = jax.random.uniform(kw, (fan_in, fan_out), jnp.float32, -bound, bound)
        b = jax.random.uniform(kb, (fan_out,), jnp.float32, -bound, bound)
        w_pad = jnp.zeros((in_pads[i - 1], N_PAD), jnp.float32)
        w_pad = w_pad.at[:fan_in, :fan_out].set(w)
        params[f"w{i}"] = w_pad.astype(jnp.bfloat16)
        b_rows.append(jnp.zeros((N_PAD,), jnp.float32).at[:fan_out].set(b))
    # Pad to 8 sublane rows (rows 4..7 unused zeros).
    b_packed = jnp.zeros((8, N_PAD), jnp.float32)
    b_packed = b_packed.at[:4, :].set(jnp.stack(b_rows, axis=0))
    params["b"] = b_packed
    return params


def reference_forward(x, params, action_size):
    """Pure-JAX reference mirroring the kernel's dtype flow (bf16 MXU, f32 acc)."""
    b = params["b"]
    h = jnp.dot(x.astype(jnp.bfloat16), params["w1"],
                preferred_element_type=jnp.float32) + b[0:1, :]
    h = jnp.maximum(h, 0.0)
    h = jnp.dot(h.astype(jnp.bfloat16), params["w2"],
                preferred_element_type=jnp.float32) + b[1:2, :]
    h = jnp.maximum(h, 0.0)
    h = jnp.dot(h.astype(jnp.bfloat16), params["w3"],
                preferred_element_type=jnp.float32) + b[2:3, :]
    h = jnp.maximum(h, 0.0)
    q = jnp.dot(h.astype(jnp.bfloat16), params["w4"],
                preferred_element_type=jnp.float32) + b[3:4, :]
    return q[:, :action_size]


if __name__ == "__main__":
    state_size = 16
    action_size = 4
    batch = 256  # amortize launch/DMA overhead: many states per call

    key = jax.random.PRNGKey(0)
    key, kx = jax.random.split(key)
    x = jax.random.normal(kx, (batch, state_size), jnp.float32)
    params = init_params(key, state_size, action_size)

    # tile_b=128 -> grid=(2,): exercises batch pipelining / megacore split.
    q = dqn_forward(x, params, action_size, tile_b=128)
    q = jax.block_until_ready(q)

    q_ref = reference_forward(x, params, action_size)
    assert q.shape == (batch, action_size), q.shape
    assert jnp.allclose(q, q_ref, atol=1e-3, rtol=1e-3), "mismatch vs reference"

    print("KERNEL_OK")
</pallas_src>

<mosaic_0001>
module attributes {stable_mosaic.version = 11 : i64} {
  func.func @dqn_mlp_kernel(%arg0: i32, %arg1: memref<128x16xf32, #tpu.memory_space<vmem>>, %arg2: memref<16x128xbf16, #tpu.memory_space<vmem>>, %arg3: memref<128x128xbf16, #tpu.memory_space<vmem>>, %arg4: memref<128x128xbf16, #tpu.memory_space<vmem>>, %arg5: memref<128x128xbf16, #tpu.memory_space<vmem>>, %arg6: memref<8x128xf32, #tpu.memory_space<vmem>>, %arg7: memref<128x128xf32, #tpu.memory_space<vmem>>) attributes {dimension_semantics = [#tpu.dimension_semantics<parallel>], iteration_bounds = array<i64: 2>, scalar_prefetch = 0 : i64, scratch_operands = 0 : i64, tpu.core_type = #tpu.core_type<tc>, window_params = [{transform_indices = @transform_0, window_bounds = array<i64: 128, 16>}, {pipeline_mode = #tpu.pipeline_mode<synchronous>, transform_indices = @transform_1, window_bounds = array<i64: 16, 128>}, {pipeline_mode = #tpu.pipeline_mode<synchronous>, transform_indices = @transform_2, window_bounds = array<i64: 128, 128>}, {pipeline_mode = #tpu.pipeline_mode<synchronous>, transform_indices = @transform_3, window_bounds = array<i64: 128, 128>}, {pipeline_mode = #tpu.pipeline_mode<synchronous>, transform_indices = @transform_4, window_bounds = array<i64: 128, 128>}, {pipeline_mode = #tpu.pipeline_mode<synchronous>, transform_indices = @transform_5, window_bounds = array<i64: 8, 128>}, {transform_indices = @transform_6, window_bounds = array<i64: 128, 128>}]} {
    %c0 = arith.constant 0 : index
    %c0_0 = arith.constant 0 : index
    %0 = vector.load %arg6[%c0, %c0_0] : memref<8x128xf32, #tpu.memory_space<vmem>>, vector<8x128xf32>
    %c0_1 = arith.constant 0 : index
    %c0_2 = arith.constant 0 : index
    %1 = vector.load %arg1[%c0_1, %c0_2] : memref<128x16xf32, #tpu.memory_space<vmem>>, vector<128x16xf32>
    %2 = arith.truncf %1 : vector<128x16xf32> to vector<128x16xbf16>
    %c0_3 = arith.constant 0 : index
    %c0_4 = arith.constant 0 : index
    %3 = vector.load %arg2[%c0_3, %c0_4] : memref<16x128xbf16, #tpu.memory_space<vmem>>, vector<16x128xbf16>
    %cst = arith.constant dense<0.000000e+00> : vector<128x128xf32>
    %4 = tpu.matmul %2, %3, %cst {dimension_numbers = #tpu.dot_dimension_numbers<[1], [0], [0], [1], [0, 0, 1, 1], [], []>} : vector<128x16xbf16>, vector<16x128xbf16>, vector<128x128xf32> -> vector<128x128xf32>
    %5 = vector.extract_strided_slice %0 {offsets = [0, 0], sizes = [1, 128], strides = [1, 1]} : vector<8x128xf32> to vector<1x128xf32>
    %6 = vector.broadcast %5 : vector<1x128xf32> to vector<128x128xf32>
    %7 = arith.addf %4, %6 : vector<128x128xf32>
    %cst_5 = arith.constant 0.000000e+00 : f32
    %8 = vector.broadcast %cst_5 : f32 to vector<128x128xf32>
    %9 = arith.maximumf %7, %8 : vector<128x128xf32>
    %10 = arith.truncf %9 : vector<128x128xf32> to vector<128x128xbf16>
    %c0_6 = arith.constant 0 : index
    %c0_7 = arith.constant 0 : index
    %11 = vector.load %arg3[%c0_6, %c0_7] : memref<128x128xbf16, #tpu.memory_space<vmem>>, vector<128x128xbf16>
    %cst_8 = arith.constant dense<0.000000e+00> : vector<128x128xf32>
    %12 = tpu.matmul %10, %11, %cst_8 {dimension_numbers = #tpu.dot_dimension_numbers<[1], [0], [0], [1], [0, 0, 1, 1], [], []>} : vector<128x128xbf16>, vector<128x128xbf16>, vector<128x128xf32> -> vector<128x128xf32>
    %13 = vector.extract_strided_slice %0 {offsets = [1, 0], sizes = [1, 128], strides = [1, 1]} : vector<8x128xf32> to vector<1x128xf32>
    %14 = vector.broadcast %13 : vector<1x128xf32> to vector<128x128xf32>
    %15 = arith.addf %12, %14 : vector<128x128xf32>
    %cst_9 = arith.constant 0.000000e+00 : f32
    %16 = vector.broadcast %cst_9 : f32 to vector<128x128xf32>
    %17 = arith.maximumf %15, %16 : vector<128x128xf32>
    %18 = arith.truncf %17 : vector<128x128xf32> to vector<128x128xbf16>
    %c0_10 = arith.constant 0 : index
    %c0_11 = arith.constant 0 : index
    %19 = vector.load %arg4[%c0_10, %c0_11] : memref<128x128xbf16, #tpu.memory_space<vmem>>, vector<128x128xbf16>
    %cst_12 = arith.constant dense<0.000000e+00> : vector<128x128xf32>
    %20 = tpu.matmul %18, %19, %cst_12 {dimension_numbers = #tpu.dot_dimension_numbers<[1], [0], [0], [1], [0, 0, 1, 1], [], []>} : vector<128x128xbf16>, vector<128x128xbf16>, vector<128x128xf32> -> vector<128x128xf32>
    %21 = vector.extract_strided_slice %0 {offsets = [2, 0], sizes = [1, 128], strides = [1, 1]} : vector<8x128xf32> to vector<1x128xf32>
    %22 = vector.broadcast %21 : vector<1x128xf32> to vector<128x128xf32>
    %23 = arith.addf %20, %22 : vector<128x128xf32>
    %cst_13 = arith.constant 0.000000e+00 : f32
    %24 = vector.broadcast %cst_13 : f32 to vector<128x128xf32>
    %25 = arith.maximumf %23, %24 : vector<128x128xf32>
    %26 = arith.truncf %25 : vector<128x128xf32> to vector<128x128xbf16>
    %c0_14 = arith.constant 0 : index
    %c0_15 = arith.constant 0 : index
    %27 = vector.load %arg5[%c0_14, %c0_15] : memref<128x128xbf16, #tpu.memory_space<vmem>>, vector<128x128xbf16>
    %cst_16 = arith.constant dense<0.000000e+00> : vector<128x128xf32>
    %28 = tpu.matmul %26, %27, %cst_16 {dimension_numbers = #tpu.dot_dimension_numbers<[1], [0], [0], [1], [0, 0, 1, 1], [], []>} : vector<128x128xbf16>, vector<128x128xbf16>, vector<128x128xf32> -> vector<128x128xf32>
    %29 = vector.extract_strided_slice %0 {offsets = [3, 0], sizes = [1, 128], strides = [1, 1]} : vector<8x128xf32> to vector<1x128xf32>
    %30 = vector.broadcast %29 : vector<1x128xf32> to vector<128x128xf32>
    %31 = arith.addf %28, %30 : vector<128x128xf32>
    %c0_17 = arith.constant 0 : index
    %c0_18 = arith.constant 0 : index
    %32 = vector.load %arg7[%c0_17, %c0_18] : memref<128x128xf32, #tpu.memory_space<vmem>>, vector<128x128xf32>
    tpu.vector_store %arg7[%c0_17, %c0_18], %31 {strides = array<i32>} : memref<128x128xf32, #tpu.memory_space<vmem>>, vector<128x128xf32>,
    return
  }
  func.func @transform_0(%arg0: i32) -> (i32, i32) {
    %c0_i32 = arith.constant 0 : i32
    %c0_i32_0 = arith.constant 0 : i32
    return %arg0, %c0_i32 : i32, i32
  }
  func.func @transform_1(%arg0: i32) -> (i32, i32) {
    %c0_i32 = arith.constant 0 : i32
    %c0_i32_0 = arith.constant 0 : i32
    %c0_i32_1 = arith.constant 0 : i32
    return %c0_i32, %c0_i32_0 : i32, i32
  }
  func.func @transform_2(%arg0: i32) -> (i32, i32) {
    %c0_i32 = arith.constant 0 : i32
    %c0_i32_0 = arith.constant 0 : i32
    %c0_i32_1 = arith.constant 0 : i32
    return %c0_i32, %c0_i32_0 : i32, i32
  }
  func.func @transform_3(%arg0: i32) -> (i32, i32) {
    %c0_i32 = arith.constant 0 : i32
    %c0_i32_0 = arith.constant 0 : i32
    %c0_i32_1 = arith.constant 0 : i32
    return %c0_i32, %c0_i32_0 : i32, i32
  }
  func.func @transform_4(%arg0: i32) -> (i32, i32) {
    %c0_i32 = arith.constant 0 : i32
    %c0_i32_0 = arith.constant 0 : i32
    %c0_i32_1 = arith.constant 0 : i32
    return %c0_i32, %c0_i32_0 : i32, i32
  }
  func.func @transform_5(%arg0: i32) -> (i32, i32) {
    %c0_i32 = arith.constant 0 : i32
    %c0_i32_0 = arith.constant 0 : i32
    %c0_i32_1 = arith.constant 0 : i32
    return %c0_i32, %c0_i32_0 : i32, i32
  }
  func.func @transform_6(%arg0: i32) -> (i32, i32) {
    %c0_i32 = arith.constant 0 : i32
    %c0_i32_0 = arith.constant 0 : i32
    return %arg0, %c0_i32 : i32, i32
  }
}

</mosaic_0001>

<bundles_post_ra>
// kernel: tpu_custom_call.1
= control target key start
LH: loop header
LB: loop body
LE: loop exit
PB: predicated region body
PF: predicated region fallthrough
CT: control target
= control target key end

     0   :  { %11 = vsyncpa [#allocation3], 0  ;;  %s1411_s0 = inlined_call_operand.vmem [shape: f32[256,16], index: 0, kind: input, shape index: {}]   ;;  %s1412_s1 = inlined_call_operand.vmem [shape: bf16[16,128], index: 1, kind: input, shape index: {}]   ;;  %s1413_s2 = inlined_call_operand.vmem [shape: bf16[128,128], index: 2, kind: input, shape index: {}]   ;;  %s1414_s3 = inlined_call_operand.vmem [shape: bf16[128,128], index: 3, kind: input, shape index: {}]   ;;  %s1415_s4 = inlined_call_operand.vmem [shape: bf16[128,128], index: 4, kind: input, shape index: {}]   ;;  %s1416_s5 = inlined_call_operand.vmem [shape: f32[8,128], index: 5, kind: input, shape index: {}]   ;;  %s1417_s6 = inlined_call_operand.hbm [shape: f32[256,128], index: 6, kind: output, shape index: {}]  }
   0x1   :  { %13 = vsyncpa [#allocation3 + $0x1], 0  ;;  %s1158_s21 = smov 0   ;;  %s1160_s22 = smov 0  }
   0x2   :  { %s1162_s23 = smov 0   ;;  %s1164_s24 = smov 0  }
   0x3 LB: > { %s1179_s25 = sadd.s32 4294967295, %s1119_s24   ;;  %s870_s26 = sadd.s32 4294967294, %s1119_s24   ;;  %s1119_s24 = sphi %s1164_s24, %s1423_s24   ;;  %s1115_s23 = sphi %s1162_s23, %s1422_s23   ;;  %s1111_s22 = sphi %s1160_s22, %s1421_s22   ;;  %s1107_s21 = sphi %s1158_s21, %s1420_s21  }
   0x4   : > { %s1183_s27 = sadd.s32 1, %s1119_s24   ;;  %s157_s28 = sadd.s32 1, %s1115_s23 }
   0x5   : > { %s154_s29 = ssub.s32 %s1119_s24, %s1183_s27  ;;  %p167_p0 = scmp.ne.s32.totalorder %s1115_s23, %s1111_s22 }
   0x6   : > { %p155_p1 = scmp.eq.s32.totalorder %s154_s29, 0  ;;  %p168_p2 = scmp.eq.s32.totalorder %s1179_s25, 1 }
   0x7   : > { %p173_p3 = scmp.ne.s32.totalorder %s1111_s22, %s1107_s21  ;;  %p174_p4 = scmp.eq.s32.totalorder %s870_s26, 1 }
   0x8   : > { %s1194_s30 = scalar_select %p155_p1, %s1115_s23, %s157_s28  }
   0x9   : > { %p1196_p5 = por %p168_p2, %p167_p0  ;;  %p1200_p6 = por %p174_p4, %p173_p3 }
   0xa   : > { %p873_p7 = scmp.ge.s32.totalorder %s1119_s24, 1  ;;  %p216_p8 = scmp.lt.s32.totalorder %s1119_s24, 3 }
   0xc   : > { %p217_p9 = pnand %p873_p7, %p216_p8 }
   0xd   : > { %s875_s11 = sshll.u32 (!%p217_p9), %s1179_s25, 4  ;;  %s243_s26 = sand.u32 (!%p217_p9), 1, %s1111_s22  }
   0xe   : > { %220 = sbr.rel (%p217_p9) target bundleno = 709 (0x2c5), region = 44  ;;  %p247_p10 = scmp.lt.s32.totalorder (!%p217_p9), %s875_s11, 31 }
   0xf   : > { %s874_s28 = sshll.u32 (!%p217_p9), %s243_s26, 7  ;;  %s1015_s9 = sshll.u32 (!%p217_p9), %s1179_s25, 7 }
  0x10   : > { %s1359_s29 = scalar_lea.vmem (!%p217_p9), [#allocation2], %s874_s28  ;;  %s793_s16 = scalar_lea.sflag (!%p217_p9), [#allocation3], %s243_s26 }
  0x11   : > { %s805_s13 = sshll.u32 (!%p217_p9), %s1359_s29, 4  ;;  %s806_s13 = int_to_ptr.vmem [resolvable:$true] %s805_s13 }
  0x13   : > { %v990_v0 = vld [vmem:[%s1412_s1] sm:$0xff]  ;;  %s1425_s11 = smov (!%p247_p10, %s875_s11), 31  ;;  %vm288_vm0 = vcmask 130048   ;;  %v998_v16 = vld [vmem:[%s1413_s2 + $0x38] sm:$0xff]  ;;  %v997_v20 = vld [vmem:[%s1413_s2 + $0x30] sm:$0xff] }
  0x14   : > { %320 = vmatpush.bf16.msra.mxu0 %v990_v0  ;;  %s876_s12 = sshll.u32 %s1425_s11, 3  ;;  %451 = vmatpush.bf16.msra.mxu1 %v998_v16  ;;  %v996_v21 = vld [vmem:[%s1413_s2 + $0x28] sm:$0xff]  ;;  %v995_v22 = vld [vmem:[%s1413_s2 + $0x20] sm:$0xff]  ;;  %v994_v25 = vld [vmem:[%s1413_s2 + $0x18] sm:$0xff] }
  0x15   : > { %s1213_s15 = scalar_lea.vmem %s1411_s0, %s876_s12  ;;  %v993_v27 = vld [vmem:[%s1413_s2 + $0x10] sm:$0xff]  ;;  %v992_v28 = vld [vmem:[%s1413_s2 + $0x8] sm:$0xff]  ;;  %v991_v29 = vld [vmem:[%s1413_s2] sm:$0xff]  ;;  %s804_s12 = scalar_lea.hbm %s1417_s6, %s1015_s9 }
  0x16   : > { %v255_v1 = vld [vmem:[%s1213_s15] sm:$0xff]  ;;  %v256_v2 = vld [vmem:[%s1213_s15 + $0x8] sm:$0xff]  ;;  %v257_v4 = vld [vmem:[%s1213_s15 + $0x10] sm:$0xff]  ;;  %s807_s14 = sshll.u32 %s804_s12, 4  ;;  %s808_s14 = int_to_ptr.hbm [resolvable:$true] %s807_s14 }
  0x17   : > { %v271_v3 = vpack.c.bf16 %v256_v2, %v255_v1  ;;  %v258_v5 = vld [vmem:[%s1213_s15 + $0x18] sm:$0xff]  ;;  %v259_v7 = vld [vmem:[%s1213_s15 + $0x20] sm:$0xff]  ;;  %v260_v8 = vld [vmem:[%s1213_s15 + $0x28] sm:$0xff]  ;;  %s1071_s17 = sshra.s32 %s808_s14, 4  ;;  %s1072_s17 = int_to_ptr.hbm [resolvable:$true] %s1071_s17 }
  0x18   : > { %v272_v6 = vpack.c.bf16 %v258_v5, %v257_v4  ;;  %v273_v9 = vpack.c.bf16 %v260_v8, %v259_v7  ;;  %v261_v10 = vld [vmem:[%s1213_s15 + $0x30] sm:$0xff]  ;;  %v262_v11 = vld [vmem:[%s1213_s15 + $0x38] sm:$0xff]  ;;  %v263_v13 = vld [vmem:[%s1213_s15 + $0x40] sm:$0xff]  ;;  %452 = vmatpush.bf16.msra.mxu1 %v997_v20  ;;  %s1073_s25 = scalar_lea.hbm %s1072_s17, 128  ;;  %p1078_p0 = scmp.lt.s32.totalorder %s1072_s17, %s1417_s6 }
  0x19   : > { %881 = vmatmul.msk.bf16.vlgmr.msra.gmra.mxu0 %vm288_vm0, %v271_v3  ;;  %v274_v12 = vpack.c.bf16 %v262_v11, %v261_v10  ;;  %v264_v14 = vld [vmem:[%s1213_s15 + $0x48] sm:$0xff]  ;;  %v265_v17 = vld [vmem:[%s1213_s15 + $0x50] sm:$0xff]  ;;  %v266_v18 = vld [vmem:[%s1213_s15 + $0x58] sm:$0xff]  ;;  %p1074_p11 = scmp.ne.s32.totalorder %s1072_s17, %s1073_s25 }
  0x1a   : > { %v275_v15 = vpack.c.bf16 %v264_v14, %v263_v13  ;;  %v276_v19 = vpack.c.bf16 %v266_v18, %v265_v17  ;;  %v267_v23 = vld [vmem:[%s1213_s15 + $0x60] sm:$0xff]  ;;  %v268_v24 = vld [vmem:[%s1213_s15 + $0x68] sm:$0xff]  ;;  %v269_v30 = vld [vmem:[%s1213_s15 + $0x70] sm:$0xff] }
  0x1b   : > { %v277_v26 = vpack.c.bf16 %v268_v24, %v267_v23  ;;  %v270_v31 = vld [vmem:[%s1213_s15 + $0x78] sm:$0xff]  ;;  %v1266_v33 = vld [vmem:[%s1416_s5] sm:$0xff]  ;;  %v1005_v14 = vld [vmem:[%s1414_s3 + $0x30] sm:$0xff]  ;;  %p1075_p12 = pnand %p1074_p11, %p1196_p5  ;;  %s1077_s15 = scalar_lea.hbm %s1417_s6, 256 }
  0x1c   : > { %453 = vmatpush.bf16.msra.mxu1 %v996_v21  ;;  %v278_v32 = vpack.c.bf16 %v270_v31, %v269_v30  ;;  %v1269_v35 = vperm.slane %v1266_v33, 0  ;;  %v1006_v10 = vld [vmem:[%s1414_s3 + $0x38] sm:$0xff]  ;;  %v1004_v16 = vld [vmem:[%s1414_s3 + $0x28] sm:$0xff]  ;;  %v1003_v17 = vld [vmem:[%s1414_s3 + $0x20] sm:$0xff]  ;;  %p1079_p1 = scmp.lt.s32.totalorder %s1077_s15, %s1073_s25 }
  0x1d   : > { %589 = vmatpush.bf16.msra.mxu2 %v1006_v10  ;;  %v1002_v21 = vld [vmem:[%s1414_s3 + $0x18] sm:$0xff]  ;;  %p1076_p13 = pneg %p1075_p12 }
  0x1e   : > { %p1080_p2 = por %p1079_p1, %p1078_p0 }
  0x20   : > { %454 = vmatpush.bf16.msra.mxu1 %v995_v22  ;;  %p1081_p3 = pnand %p1080_p2, %p1076_p13 }
  0x21   : > { %590 = vmatpush.bf16.msra.mxu2 %v1005_v14 }
  0x24   : > { %455 = vmatpush.bf16.msra.mxu1 %v994_v25  ;;  %v1001_v25 = vld [vmem:[%s1414_s3 + $0x10] sm:$0xff] }
  0x25   : > { %591 = vmatpush.bf16.msra.mxu2 %v1004_v16 }
  0x28   : > { %456 = vmatpush.bf16.msra.mxu1 %v993_v27  ;;  %v1000_v27 = vld [vmem:[%s1414_s3 + $0x8] sm:$0xff] }
  0x29   : > { %882 = vmatmul.msk.bf16.gmra.mxu0 %vm288_vm0, %v272_v6  ;;  %592 = vmatpush.bf16.msra.mxu2 %v1003_v17  ;;  %v1013_v17 = vld [vmem:[%s1415_s4 + $0x30] sm:$0xff] }
  0x2c   : > { %457 = vmatpush.bf16.msra.mxu1 %v992_v28  ;;  %v999_v28 = vld [vmem:[%s1414_s3] sm:$0xff] }
  0x2d   : > { %593 = vmatpush.bf16.msra.mxu2 %v1002_v21 }
  0x30   : > { %458 = vmatpush.bf16.msra.mxu1 %v991_v29 }
  0x31   : > { %594 = vmatpush.bf16.msra.mxu2 %v1001_v25 }
  0x35   : > { %595 = vmatpush.bf16.msra.mxu2 %v1000_v27  ;;  %v1010_v27 = vld [vmem:[%s1415_s4 + $0x18] sm:$0xff] }
  0x39   : > { %883 = vmatmul.msk.bf16.gmra.mxu0 %vm288_vm0, %v273_v9  ;;  %596 = vmatpush.bf16.msra.mxu2 %v999_v28  ;;  %v1009_v28 = vld [vmem:[%s1415_s4 + $0x10] sm:$0xff] }
  0x49   : > { %884 = vmatmul.msk.bf16.gmra.mxu0 %vm288_vm0, %v274_v12 }
  0x59   : > { %885 = vmatmul.msk.bf16.gmra.mxu0 %vm288_vm0, %v275_v15 }
  0x69   : > { %886 = vmatmul.msk.bf16.gmra.mxu0 %vm288_vm0, %v276_v19 }
  0x79   : > { %887 = vmatmul.msk.bf16.gmra.mxu0 %vm288_vm0, %v277_v26 }
  0x89   : > { %888 = vmatmul.msk.bf16.gmra.mxu0 %vm288_vm0, %v278_v32 }
  0x96   : > { %v322_v34 = vpop.f32.mrf.mxu0 }
  0x97   : > { %v323_v36 = vadd.f32 %v322_v34, %v1269_v35 }
  0x99   : > { %v362_v39 = vmax.f32 %v323_v36, 0.0 }
  0x9e   : > { %v324_v37 = vpop.f32.mrf.mxu0 }
  0x9f   : > { %v325_v38 = vadd.f32 %v324_v37, %v1269_v35 }
  0xa1   : > { %v363_v40 = vmax.f32 %v325_v38, 0.0  ;;  %v1312_v38 = vperm.slane %v1266_v33, 1 }
  0xa3   : > { %v378_v41 = vpack.c.bf16 %v363_v40, %v362_v39 }
  0xa5   : > { %459 = vmatmul.bf16.vlgmr.msra.gmra.mxu1 %v378_v41 }
  0xa6   : > { %v327_v42 = vpop.f32.mrf.mxu0 }
  0xa7   : > { %v328_v43 = vadd.f32 %v327_v42, %v1269_v35 }
  0xa9   : > { %v364_v46 = vmax.f32 %v328_v43, 0.0 }
  0xae   : > { %v329_v44 = vpop.f32.mrf.mxu0 }
  0xaf   : > { %v330_v45 = vadd.f32 %v329_v44, %v1269_v35 }
  0xb1   : > { %v365_v47 = vmax.f32 %v330_v45, 0.0 }
  0xb3   : > { %v379_v48 = vpack.c.bf16 %v365_v47, %v364_v46 }
  0xb5   : > { %464 = vmatmul.bf16.gmra.mxu1 %v379_v48 }
  0xb6   : > { %v332_v49 = vpop.f32.mrf.mxu0 }
  0xb7   : > { %v333_v50 = vadd.f32 %v332_v49, %v1269_v35 }
  0xb9   : > { %v366_v53 = vmax.f32 %v333_v50, 0.0 }
  0xbe   : > { %v334_v51 = vpop.f32.mrf.mxu0 }
  0xbf   : > { %v335_v52 = vadd.f32 %v334_v51, %v1269_v35 }
  0xc1   : > { %v367_v54 = vmax.f32 %v335_v52, 0.0 }
  0xc3   : > { %v380_v55 = vpack.c.bf16 %v367_v54, %v366_v53 }
  0xc5   : > { %469 = vmatmul.bf16.gmra.mxu1 %v380_v55 }
  0xc6   : > { %v337_v56 = vpop.f32.mrf.mxu0 }
  0xc7   : > { %v338_v57 = vadd.f32 %v337_v56, %v1269_v35 }
  0xc9   : > { %v368_v60 = vmax.f32 %v338_v57, 0.0 }
  0xce   : > { %v339_v58 = vpop.f32.mrf.mxu0 }
  0xcf   : > { %v340_v59 = vadd.f32 %v339_v58, %v1269_v35 }
  0xd1   : > { %v369_v61 = vmax.f32 %v340_v59, 0.0 }
  0xd3   : > { %v381_v62 = vpack.c.bf16 %v369_v61, %v368_v60 }
  0xd5   : > { %474 = vmatmul.bf16.gmra.mxu1 %v381_v62 }
  0xd6   : > { %v342_v63 = vpop.f32.mrf.mxu0 }
  0xd7   : > { %v343_v0 = vadd.f32 %v342_v63, %v1269_v35 }
  0xd9   : > { %v370_v3 = vmax.f32 %v343_v0, 0.0 }
  0xde   : > { %v344_v1 = vpop.f32.mrf.mxu0 }
  0xdf   : > { %v345_v2 = vadd.f32 %v344_v1, %v1269_v35 }
  0xe1   : > { %v371_v4 = vmax.f32 %v345_v2, 0.0 }
  0xe3   : > { %v382_v5 = vpack.c.bf16 %v371_v4, %v370_v3 }
  0xe5   : > { %479 = vmatmul.bf16.gmra.mxu1 %v382_v5 }
  0xe6   : > { %v347_v6 = vpop.f32.mrf.mxu0 }
  0xe7   : > { %v348_v7 = vadd.f32 %v347_v6, %v1269_v35 }
  0xe9   : > { %v372_v11 = vmax.f32 %v348_v7, 0.0 }
  0xee   : > { %v349_v8 = vpop.f32.mrf.mxu0 }
  0xef   : > { %v350_v9 = vadd.f32 %v349_v8, %v1269_v35 }
  0xf1   : > { %v373_v12 = vmax.f32 %v350_v9, 0.0 }
  0xf3   : > { %v383_v13 = vpack.c.bf16 %v373_v12, %v372_v11 }
  0xf5   : > { %484 = vmatmul.bf16.gmra.mxu1 %v383_v13 }
  0xf6   : > { %v352_v15 = vpop.f32.mrf.mxu0 }
  0xf7   : > { %v353_v18 = vadd.f32 %v352_v15, %v1269_v35  ;;  %v1014_v15 = vld [vmem:[%s1415_s4 + $0x38] sm:$0xff] }
  0xf8   : > { %727 = vmatpush.bf16.msra.mxu3 %v1014_v15 }
  0xf9   : > { %v374_v22 = vmax.f32 %v353_v18, 0.0  ;;  %v1012_v18 = vld [vmem:[%s1415_s4 + $0x28] sm:$0xff] }
  0xfc   : > { %728 = vmatpush.bf16.msra.mxu3 %v1013_v17 }
  0xfe   : > { %v354_v19 = vpop.f32.mrf.mxu0 }
  0xff   : > { %v355_v20 = vadd.f32 %v354_v19, %v1269_v35 }
 0x100   : > { %729 = vmatpush.bf16.msra.mxu3 %v1012_v18 }
 0x101   : > { %v375_v23 = vmax.f32 %v355_v20, 0.0 }
 0x103   : > { %v384_v24 = vpack.c.bf16 %v375_v23, %v374_v22  ;;  %v1011_v22 = vld [vmem:[%s1415_s4 + $0x20] sm:$0xff] }
 0x104   : > { %730 = vmatpush.bf16.msra.mxu3 %v1011_v22 }
 0x105   : > { %489 = vmatmul.bf16.gmra.mxu1 %v384_v24 }
 0x106   : > { %v357_v26 = vpop.f32.mrf.mxu0 }
 0x107   : > { %v358_v29 = vadd.f32 %v357_v26, %v1269_v35 }
 0x108   : > { %731 = vmatpush.bf16.msra.mxu3 %v1010_v27 }
 0x109   : > { %v376_v32 = vmax.f32 %v358_v29, 0.0 }
 0x10c   : > { %732 = vmatpush.bf16.msra.mxu3 %v1009_v28 }
 0x10e   : > { %v359_v30 = vpop.f32.mrf.mxu0 }
 0x10f   : > { %v360_v31 = vadd.f32 %v359_v30, %v1269_v35 }
 0x111   : > { %v377_v34 = vmax.f32 %v360_v31, 0.0  ;;  %v1008_v31 = vld [vmem:[%s1415_s4 + $0x8] sm:$0xff] }
 0x112   : > { %733 = vmatpush.bf16.msra.mxu3 %v1008_v31  ;;  %v678_v31 = vperm.slane %v1266_v33, 3 }
 0x113   : > { %v385_v36 = vpack.c.bf16 %v377_v34, %v376_v32 }
 0x115   : > { %494 = vmatmul.bf16.gmra.mxu1 %v385_v36 }
 0x122   : > { %v460_v37 = vpop.f32.mrf.mxu1 }
 0x123   : > { %v461_v39 = vadd.f32 %v460_v37, %v1312_v38  ;;  %v1007_v37 = vld [vmem:[%s1415_s4] sm:$0xff] }
 0x124   : > { %734 = vmatpush.bf16.msra.mxu3 %v1007_v37 }
 0x125   : > { %v500_v42 = vmax.f32 %v461_v39, 0.0 }
 0x12a   : > { %v462_v40 = vpop.f32.mrf.mxu1 }
 0x12b   : > { %v463_v41 = vadd.f32 %v462_v40, %v1312_v38 }
 0x12d   : > { %v501_v43 = vmax.f32 %v463_v41, 0.0  ;;  %v540_v41 = vperm.slane %v1266_v33, 2 }
 0x12f   : > { %v516_v44 = vpack.c.bf16 %v501_v43, %v500_v42 }
 0x131   : > { %597 = vmatmul.bf16.vlgmr.msra.gmra.mxu2 %v516_v44 }
 0x132   : > { %v465_v45 = vpop.f32.mrf.mxu1 }
 0x133   : > { %v466_v35 = vadd.f32 %v465_v45, %v1312_v38 }
 0x135   : > { %v502_v48 = vmax.f32 %v466_v35, 0.0 }
 0x13a   : > { %v467_v46 = vpop.f32.mrf.mxu1 }
 0x13b   : > { %v468_v47 = vadd.f32 %v467_v46, %v1312_v38 }
 0x13d   : > { %v503_v49 = vmax.f32 %v468_v47, 0.0 }
 0x13f   : > { %v517_v50 = vpack.c.bf16 %v503_v49, %v502_v48 }
 0x141   : > { %602 = vmatmul.bf16.gmra.mxu2 %v517_v50 }
 0x142   : > { %v470_v51 = vpop.f32.mrf.mxu1 }
 0x143   : > { %v471_v52 = vadd.f32 %v470_v51, %v1312_v38 }
 0x145   : > { %v504_v55 = vmax.f32 %v471_v52, 0.0 }
 0x14a   : > { %v472_v53 = vpop.f32.mrf.mxu1 }
 0x14b   : > { %v473_v54 = vadd.f32 %v472_v53, %v1312_v38 }
 0x14d   : > { %v505_v56 = vmax.f32 %v473_v54, 0.0 }
 0x14f   : > { %v518_v57 = vpack.c.bf16 %v505_v56, %v504_v55 }
 0x151   : > { %607 = vmatmul.bf16.gmra.mxu2 %v518_v57 }
 0x152   : > { %v475_v58 = vpop.f32.mrf.mxu1 }
 0x153   : > { %v476_v59 = vadd.f32 %v475_v58, %v1312_v38 }
 0x155   : > { %v506_v62 = vmax.f32 %v476_v59, 0.0 }
 0x15a   : > { %v477_v60 = vpop.f32.mrf.mxu1 }
 0x15b   : > { %v478_v61 = vadd.f32 %v477_v60, %v1312_v38 }
 0x15d   : > { %v507_v63 = vmax.f32 %v478_v61, 0.0 }
 0x15f   : > { %v519_v0 = vpack.c.bf16 %v507_v63, %v506_v62 }
 0x161   : > { %612 = vmatmul.bf16.gmra.mxu2 %v519_v0 }
 0x162   : > { %v480_v1 = vpop.f32.mrf.mxu1 }
 0x163   : > { %v481_v2 = vadd.f32 %v480_v1, %v1312_v38 }
 0x165   : > { %v508_v5 = vmax.f32 %v481_v2, 0.0 }
 0x16a   : > { %v482_v3 = vpop.f32.mrf.mxu1 }
 0x16b   : > { %v483_v4 = vadd.f32 %v482_v3, %v1312_v38 }
 0x16d   : > { %v509_v6 = vmax.f32 %v483_v4, 0.0 }
 0x16f   : > { %v520_v7 = vpack.c.bf16 %v509_v6, %v508_v5 }
 0x171   : > { %617 = vmatmul.bf16.gmra.mxu2 %v520_v7 }
 0x172   : > { %v485_v8 = vpop.f32.mrf.mxu1 }
 0x173   : > { %v486_v9 = vadd.f32 %v485_v8, %v1312_v38 }
 0x175   : > { %v510_v12 = vmax.f32 %v486_v9, 0.0 }
 0x17a   : > { %v487_v10 = vpop.f32.mrf.mxu1 }
 0x17b   : > { %v488_v11 = vadd.f32 %v487_v10, %v1312_v38 }
 0x17d   : > { %v511_v13 = vmax.f32 %v488_v11, 0.0 }
 0x17f   : > { %v521_v14 = vpack.c.bf16 %v511_v13, %v510_v12 }
 0x181   : > { %622 = vmatmul.bf16.gmra.mxu2 %v521_v14 }
 0x182   : > { %v490_v16 = vpop.f32.mrf.mxu1 }
 0x183   : > { %v491_v19 = vadd.f32 %v490_v16, %v1312_v38 }
 0x185   : > { %v512_v23 = vmax.f32 %v491_v19, 0.0 }
 0x18a   : > { %v492_v20 = vpop.f32.mrf.mxu1 }
 0x18b   : > { %v493_v21 = vadd.f32 %v492_v20, %v1312_v38 }
 0x18d   : > { %v513_v24 = vmax.f32 %v493_v21, 0.0 }
 0x18f   : > { %v522_v25 = vpack.c.bf16 %v513_v24, %v512_v23 }
 0x191   : > { %627 = vmatmul.bf16.gmra.mxu2 %v522_v25 }
 0x192   : > { %v495_v26 = vpop.f32.mrf.mxu1 }
 0x193   : > { %v496_v29 = vadd.f32 %v495_v26, %v1312_v38 }
 0x195   : > { %v514_v34 = vmax.f32 %v496_v29, 0.0 }
 0x19a   : > { %v497_v30 = vpop.f32.mrf.mxu1 }
 0x19b   : > { %v498_v32 = vadd.f32 %v497_v30, %v1312_v38 }
 0x19d   : > { %v515_v36 = vmax.f32 %v498_v32, 0.0 }
 0x19f   : > { %v523_v39 = vpack.c.bf16 %v515_v36, %v514_v34 }
 0x1a1   : > { %632 = vmatmul.bf16.gmra.mxu2 %v523_v39 }
 0x1b4   : > { %v598_v40 = vpop.f32.mrf.mxu2 }
 0x1b5   : > { %v599_v42 = vadd.f32 %v598_v40, %v540_v41 }
 0x1b7   : > { %v638_v45 = vmax.f32 %v599_v42, 0.0 }
 0x1bc   : > { %v600_v43 = vpop.f32.mrf.mxu2 }
 0x1bd   : > { %v601_v44 = vadd.f32 %v600_v43, %v540_v41 }
 0x1bf   : > { %v639_v35 = vmax.f32 %v601_v44, 0.0 }
 0x1c1   : > { %v654_v46 = vpack.c.bf16 %v639_v35, %v638_v45 }
 0x1c3   : > { %735 = vmatmul.bf16.vlgmr.msra.gmra.mxu3 %v654_v46 }
 0x1c4   : > { %v603_v38 = vpop.f32.mrf.mxu2 }
 0x1c5   : > { %v604_v47 = vadd.f32 %v603_v38, %v540_v41 }
 0x1c7   : > { %v640_v50 = vmax.f32 %v604_v47, 0.0 }
 0x1cc   : > { %v605_v48 = vpop.f32.mrf.mxu2 }
 0x1cd   : > { %v606_v49 = vadd.f32 %v605_v48, %v540_v41 }
 0x1cf   : > { %v641_v51 = vmax.f32 %v606_v49, 0.0 }
 0x1d1   : > { %v655_v52 = vpack.c.bf16 %v641_v51, %v640_v50 }
 0x1d3   : > { %740 = vmatmul.bf16.gmra.mxu3 %v655_v52 }
 0x1d4   : > { %v608_v53 = vpop.f32.mrf.mxu2 }
 0x1d5   : > { %v609_v54 = vadd.f32 %v608_v53, %v540_v41 }
 0x1d7   : > { %v642_v57 = vmax.f32 %v609_v54, 0.0 }
 0x1dc   : > { %v610_v55 = vpop.f32.mrf.mxu2 }
 0x1dd   : > { %v611_v56 = vadd.f32 %v610_v55, %v540_v41 }
 0x1df   : > { %v643_v58 = vmax.f32 %v611_v56, 0.0 }
 0x1e1   : > { %v656_v59 = vpack.c.bf16 %v643_v58, %v642_v57 }
 0x1e3   : > { %745 = vmatmul.bf16.gmra.mxu3 %v656_v59 }
 0x1e4   : > { %v613_v60 = vpop.f32.mrf.mxu2 }
 0x1e5   : > { %v614_v61 = vadd.f32 %v613_v60, %v540_v41 }
 0x1e7   : > { %v644_v0 = vmax.f32 %v614_v61, 0.0 }
 0x1ec   : > { %v615_v62 = vpop.f32.mrf.mxu2 }
 0x1ed   : > { %v616_v63 = vadd.f32 %v615_v62, %v540_v41 }
 0x1ef   : > { %v645_v1 = vmax.f32 %v616_v63, 0.0 }
 0x1f1   : > { %v657_v2 = vpack.c.bf16 %v645_v1, %v644_v0 }
 0x1f3   : > { %750 = vmatmul.bf16.gmra.mxu3 %v657_v2 }
 0x1f4   : > { %v618_v3 = vpop.f32.mrf.mxu2 }
 0x1f5   : > { %v619_v4 = vadd.f32 %v618_v3, %v540_v41 }
 0x1f7   : > { %v646_v7 = vmax.f32 %v619_v4, 0.0 }
 0x1fc   : > { %v620_v5 = vpop.f32.mrf.mxu2 }
 0x1fd   : > { %v621_v6 = vadd.f32 %v620_v5, %v540_v41 }
 0x1ff   : > { %v647_v8 = vmax.f32 %v621_v6, 0.0 }
 0x201   : > { %v658_v9 = vpack.c.bf16 %v647_v8, %v646_v7 }
 0x203   : > { %755 = vmatmul.bf16.gmra.mxu3 %v658_v9 }
 0x204   : > { %v623_v10 = vpop.f32.mrf.mxu2 }
 0x205   : > { %v624_v11 = vadd.f32 %v623_v10, %v540_v41 }
 0x207   : > { %v648_v14 = vmax.f32 %v624_v11, 0.0 }
 0x20c   : > { %v625_v12 = vpop.f32.mrf.mxu2 }
 0x20d   : > { %v626_v13 = vadd.f32 %v625_v12, %v540_v41 }
 0x20f   : > { %v649_v15 = vmax.f32 %v626_v13, 0.0 }
 0x211   : > { %v659_v16 = vpack.c.bf16 %v649_v15, %v648_v14 }
 0x213   : > { %760 = vmatmul.bf16.gmra.mxu3 %v659_v16 }
 0x214   : > { %v628_v17 = vpop.f32.mrf.mxu2 }
 0x215   : > { %v629_v18 = vadd.f32 %v628_v17, %v540_v41 }
 0x217   : > { %v650_v21 = vmax.f32 %v629_v18, 0.0 }
 0x21c   : > { %v630_v19 = vpop.f32.mrf.mxu2 }
 0x21d   : > { %v631_v20 = vadd.f32 %v630_v19, %v540_v41 }
 0x21f   : > { %v651_v22 = vmax.f32 %v631_v20, 0.0 }
 0x221   : > { %v660_v23 = vpack.c.bf16 %v651_v22, %v650_v21 }
 0x223   : > { %765 = vmatmul.bf16.gmra.mxu3 %v660_v23 }
 0x224   : > { %v633_v24 = vpop.f32.mrf.mxu2 }
 0x225   : > { %v634_v25 = vadd.f32 %v633_v24, %v540_v41 }
 0x227   : > { %v652_v28 = vmax.f32 %v634_v25, 0.0 }
 0x22c   : > { %v635_v26 = vpop.f32.mrf.mxu2 }
 0x22d   : > { %v636_v27 = vadd.f32 %v635_v26, %v540_v41 }
 0x22f   : > { %v653_v29 = vmax.f32 %v636_v27, 0.0 }
 0x231   : > { %v661_v30 = vpack.c.bf16 %v653_v29, %v652_v28 }
 0x233   : > { %770 = vmatmul.bf16.gmra.mxu3 %v661_v30 }
 0x246   : > { %v736_v32 = vpop.f32.mrf.mxu3 }
 0x247   : > { %v737_v34 = vadd.f32 %v736_v32, %v678_v31 }
 0x249   : > { %776 = vst [vmem:[%s1359_s29] sm:$0xff] %v737_v34 }
 0x24e   : > { %v738_v36 = vpop.f32.mrf.mxu3 }
 0x24f   : > { %v739_v37 = vadd.f32 %v738_v36, %v678_v31 }
 0x251   : > { %777 = vst [vmem:[%s1359_s29 + $0x8] sm:$0xff] %v739_v37 }
 0x256   : > { %v741_v39 = vpop.f32.mrf.mxu3 }
 0x257   : > { %v742_v40 = vadd.f32 %v741_v39, %v678_v31 }
 0x259   : > { %778 = vst [vmem:[%s1359_s29 + $0x10] sm:$0xff] %v742_v40 }
 0x25e   : > { %v743_v33 = vpop.f32.mrf.mxu3 }
 0x25f   : > { %v744_v41 = vadd.f32 %v743_v33, %v678_v31 }
 0x261   : > { %779 = vst [vmem:[%s1359_s29 + $0x18] sm:$0xff] %v744_v41 }
 0x266   : > { %v746_v42 = vpop.f32.mrf.mxu3 }
 0x267   : > { %v747_v43 = vadd.f32 %v746_v42, %v678_v31 }
 0x269   : > { %780 = vst [vmem:[%s1359_s29 + $0x20] sm:$0xff] %v747_v43 }
 0x26e   : > { %v748_v44 = vpop.f32.mrf.mxu3 }
 0x26f   : > { %v749_v45 = vadd.f32 %v748_v44, %v678_v31 }
 0x271   : > { %781 = vst [vmem:[%s1359_s29 + $0x28] sm:$0xff] %v749_v45 }
 0x276   : > { %v751_v35 = vpop.f32.mrf.mxu3 }
 0x277   : > { %v752_v46 = vadd.f32 %v751_v35, %v678_v31 }
 0x279   : > { %782 = vst [vmem:[%s1359_s29 + $0x30] sm:$0xff] %v752_v46 }
 0x27e   : > { %v753_v38 = vpop.f32.mrf.mxu3 }
 0x27f   : > { %v754_v47 = vadd.f32 %v753_v38, %v678_v31 }
 0x281   : > { %783 = vst [vmem:[%s1359_s29 + $0x38] sm:$0xff] %v754_v47 }
 0x286   : > { %v756_v48 = vpop.f32.mrf.mxu3 }
 0x287   : > { %v757_v49 = vadd.f32 %v756_v48, %v678_v31 }
 0x289   : > { %784 = vst [vmem:[%s1359_s29 + $0x40] sm:$0xff] %v757_v49 }
 0x28e   : > { %v758_v50 = vpop.f32.mrf.mxu3 }
 0x28f   : > { %v759_v51 = vadd.f32 %v758_v50, %v678_v31 }
 0x291   : > { %785 = vst [vmem:[%s1359_s29 + $0x48] sm:$0xff] %v759_v51 }
 0x296   : > { %v761_v52 = vpop.f32.mrf.mxu3 }
 0x297   : > { %v762_v53 = vadd.f32 %v761_v52, %v678_v31 }
 0x299   : > { %786 = vst [vmem:[%s1359_s29 + $0x50] sm:$0xff] %v762_v53 }
 0x29e   : > { %v763_v54 = vpop.f32.mrf.mxu3 }
 0x29f   : > { %v764_v55 = vadd.f32 %v763_v54, %v678_v31 }
 0x2a1   : > { %787 = vst [vmem:[%s1359_s29 + $0x58] sm:$0xff] %v764_v55 }
 0x2a6   : > { %v766_v56 = vpop.f32.mrf.mxu3 }
 0x2a7   : > { %v767_v57 = vadd.f32 %v766_v56, %v678_v31 }
 0x2a9   : > { %788 = vst [vmem:[%s1359_s29 + $0x60] sm:$0xff] %v767_v57 }
 0x2ae   : > { %v768_v58 = vpop.f32.mrf.mxu3 }
 0x2af   : > { %v769_v59 = vadd.f32 %v768_v58, %v678_v31 }
 0x2b1   : > { %789 = vst [vmem:[%s1359_s29 + $0x68] sm:$0xff] %v769_v59 }
 0x2b6   : > { %v771_v60 = vpop.f32.mrf.mxu3 }
 0x2b7   : > { %v772_v61 = vadd.f32 %v771_v60, %v678_v31 }
 0x2b9   : > { %790 = vst [vmem:[%s1359_s29 + $0x70] sm:$0xff] %v772_v61 }
 0x2be   : > { %v773_v62 = vpop.f32.mrf.mxu3 }
 0x2bf   : > { %v774_v63 = vadd.f32 %v773_v62, %v678_v31 }
 0x2c1   : > { %791 = vst [vmem:[%s1359_s29 + $0x78] sm:$0xff] %v774_v63 }
 0x2c2   : > { %1084 = shalt.err (!%p1081_p3)
}
 0x2c3   : > { %s1121_s26 = smov 128   ;;  %s1122_s29 = smov 8  }
 0x2c4   : > { %1016 = dma.vmem_to_hbm [thread:$0]  (%p1196_p5), %s806_s13, 2048, %s808_s14, %s793_s16, %s1121_s26, %s1121_s26, %s1122_s29  }
 0x2c5 PF: > { %p1022_p4 = scmp.ge.s32.totalorder %s1119_s24, 2  ;;  %s822_s9 = sand.u32 1, %s1107_s21  }
 0x2c6   : > { %s823_s10 = scalar_lea.sflag [#allocation3], %s822_s9 }
 0x2c7   : > { %p1019_p7 = pnand %p1022_p4, %p1200_p6 }
 0x2c9   : > { %p1020_p8 = pneg %p1019_p7 }
 0x2cb   : > { %1102 = dma.done.wait (%p1020_p8), %s823_s10, 2048  }
 0x2cc   : > { %1104 = vsyncadd (%p1020_p8), %s823_s10, 4294965248  ;;  %p16_p9 = scmp.ge.s32.totalorder %s1183_s27, 4   ;;  %s1420_s21 = smov %s1111_s22 }
 0x2cd   : > { %s1421_s22 = smov %s1115_s23  ;;  %s1422_s23 = smov %s1194_s30 }
 0x2ce   : > { %s1423_s24 = smov %s1183_s27  ;;  %18 = sbr.rel (!%p16_p9) target bundleno = 3 (0x3), region = 79 }
 0x2d3   :  { %829 = vsyncpa [#allocation3], 1 }
 0x2d4   :  { %831 = vsyncpa [#allocation3 + $0x1], 1 }

</bundles_post_ra>
